<compile_context>
chip_gen: v6e
topology: v6e:2x2x1
jax: 0.10.0
libtpu: 0.0.40
codegen_flags: <defaults>
</compile_context>

<pallas_src>
import math
import functools

import jax
import jax.numpy as jnp
from jax import lax
from jax.experimental import pallas as pl
from jax.experimental.pallas import tpu as pltpu


# ----------------------------------------------------------------------------
# Pallas kernel: one block of Bb batch elements per grid step.
# ----------------------------------------------------------------------------
def mla_kernel(x_ref, wqk_ref, wv_ref, lkbd_ref, cos_ref, sin_ref, wp_ref,
               o_ref, acc_ref, *, n_head, seq_len, kv_tile):
    R, C = x_ref.shape                      # R = Bb * T rows of (batch, pos) pairs
    T = seq_len
    Bb = R // T
    hd = C // n_head
    HL = lkbd_ref.shape[1]                  # n_head * latents-per-head
    L = HL // n_head

    x = x_ref[...]                                                     # (R, C) bf16

    # Fused Q|Qrot|K|Krot projection: one (R,C)@(C,4C) MXU pass, f32 accumulate
    # (RoPE / softmax elementwise math stays f32). 1/sqrt(hd) is folded into
    # the Q and Qrot columns of the fused weight.
    qk = jnp.dot(x, wqk_ref[...], preferred_element_type=jnp.float32)  # (R, 4C)

    # V projection: the f32 result is cast to bf16 immediately, so no f32 V
    # slab is carried across the head loop.
    v3 = jnp.dot(x, wv_ref[...], preferred_element_type=jnp.float32
                 ).astype(jnp.bfloat16).reshape(Bb, T, C)

    # RoPE: the rotate-half permutation AND its sign are pre-baked into the
    # *_rot weight columns, so the rotation is two FMAs against the compact
    # (T, C) tables broadcast over the Bb batch elements of this block.
    cos = jnp.tile(cos_ref[...], (Bb, 1))                              # (R, C) f32
    sin = jnp.tile(sin_ref[...], (Bb, 1))
    q2 = (qk[:, :C] * cos + qk[:, C:2 * C] * sin).astype(jnp.bfloat16)
    k2 = (qk[:, 2 * C:3 * C] * cos + qk[:, 3 * C:] * sin).astype(jnp.bfloat16)

    # All heads' latent-key scores in ONE matmul (block-diagonal latent weight).
    s2_all = jnp.dot(q2, lkbd_ref[...],
                     preferred_element_type=jnp.float32).reshape(Bb, T, HL)

    q3 = q2.reshape(Bb, T, C)
    k3 = k2.reshape(Bb, T, C)

    # (T, T) causal additive bias, built once and broadcast over Bb and heads.
    # Scores stay f32, so -1e30 is safe (never turns into -inf / NaN).
    row = lax.broadcasted_iota(jnp.int32, (T, T), 0)
    col = lax.broadcasted_iota(jnp.int32, (T, T), 1)
    bias = jnp.where(col <= row, 0.0, -1e30).astype(jnp.float32)

    # TODO(synk): for production configs (n_head >= 8, head_dim a multiple of
    # 128) convert this fully-unrolled head loop into lax.fori_loop with
    # pl.ds/pl.multiple_of lane slicing (bounds live ranges) and process heads
    # in pairs so the scratch stores are 128-lane dense.
    for h in range(n_head):
        qh = q3[:, :, h * hd:(h + 1) * hd]                   # (Bb, T, hd) bf16
        s2 = s2_all[:, :, h * L:(h + 1) * L]                 # (Bb, T, L)  f32

        # Online softmax (flash-style) over KV tiles: only a (Bb, T, kv_tile)
        # score tile is live at a time. The latent keys (always visible,
        # zero-valued) initialize m/l so m is finite from the start.
        m = jnp.max(s2, axis=-1, keepdims=True)              # (Bb, T, 1)
        l = jnp.sum(jnp.exp(s2 - m), axis=-1, keepdims=True)
        acc = jnp.zeros((Bb, T, hd), jnp.float32)

        for j0 in range(0, T, kv_tile):
            ts = min(kv_tile, T - j0)
            kh = k3[:, j0:j0 + ts, h * hd:(h + 1) * hd]      # (Bb, ts, hd)
            vh = v3[:, j0:j0 + ts, h * hd:(h + 1) * hd]
            # single full-depth (K = head_dim) MXU contraction per head/tile
            s1 = jnp.einsum('btd,bsd->bts', qh, kh,
                            preferred_element_type=jnp.float32)   # (Bb, T, ts)
            s1 = s1 + bias[None, :, j0:j0 + ts]
            m_new = jnp.maximum(m, jnp.max(s1, axis=-1, keepdims=True))
            alpha = jnp.exp(m - m_new)
            p1 = jnp.exp(s1 - m_new)
            l = alpha * l + jnp.sum(p1, axis=-1, keepdims=True)
            # latent values are zero -> only real keys feed the numerator
            acc = alpha * acc + jnp.einsum('bts,bsd->btd',
                                           p1.astype(jnp.bfloat16), vh,
                                           preferred_element_type=jnp.float32)
            m = m_new

        inv = pl.reciprocal(l, approx=True)        # EUP slot, not a VALU divide
        acc_ref[:, :, h * hd:(h + 1) * hd] = (acc * inv).astype(jnp.bfloat16)

    # Output projection: one (R, C) @ (C, C) MXU pass from the bf16 scratch slab.
    att = acc_ref[...].reshape(R, C)
    o_ref[...] = jnp.dot(att, wp_ref[...],
                         preferred_element_type=jnp.float32).astype(o_ref.dtype)


# ----------------------------------------------------------------------------
# Wrapper: weight fusion / permutation, RoPE tables, BlockSpecs, pallas_call.
# ----------------------------------------------------------------------------
def multi_latent_attention(x, params, *, n_head, rope_theta=10000.0,
                           block_batch=None, rows_per_block=512, kv_tile=None):
    B, T, C = x.shape
    assert C % n_head == 0
    hd = C // n_head
    assert hd % 2 == 0
    hd2 = hd // 2
    L = n_head // 2

    # Rows per grid step: amortize per-step overhead, but keep >= 2 grid steps
    # so dimension_semantics=("parallel",) can shard both TensorCores on v7x.
    # (Raise rows_per_block toward 1024 on v6e's 128 MiB VMEM; not on v7x.)
    if block_batch is None:
        block_batch = 1
        min_steps = 2 if B >= 2 else 1
        for cand in range(1, B + 1):
            if B % cand == 0 and cand * T <= rows_per_block and B // cand >= min_steps:
                block_batch = cand
    Bb = block_batch
    assert B % Bb == 0
    R = Bb * T
    if kv_tile is None:
        kv_tile = min(T, 512)

    # Per-head [evens | odds] column permutation and its rotate-half companion
    # (the rotate-half sign is folded into the weight, not the sin table).
    ar = jnp.arange(hd2)
    head_base = jnp.arange(n_head)[:, None] * hd
    perm = (head_base + jnp.concatenate([2 * ar, 2 * ar + 1])[None, :]).reshape(-1)
    perm_rot = (head_base + jnp.concatenate([2 * ar + 1, 2 * ar])[None, :]).reshape(-1)
    sign_rot = jnp.tile(jnp.concatenate([-jnp.ones(hd2, jnp.float32),
                                         jnp.ones(hd2, jnp.float32)]), n_head)

    inv_scale = 1.0 / math.sqrt(hd)
    wq = params['Wq'].T[:, perm] * inv_scale                   # fold 1/sqrt(hd) into Q
    wq_r = params['Wq'].T[:, perm_rot] * sign_rot[None, :] * inv_scale
    wk = params['Wk'].T[:, perm]
    wk_r = params['Wk'].T[:, perm_rot] * sign_rot[None, :]
    w_qk = jnp.concatenate([wq, wq_r, wk, wk_r], axis=1).astype(jnp.bfloat16)  # (C, 4C)
    w_v = params['Wv'].T.astype(jnp.bfloat16)                                   # (C, C)
    w_p = params['Wp'].T.astype(jnp.bfloat16)                                   # (C, C)

    # Latent keys are batch independent: project + permute once here, pack as a
    # block-diagonal (C, n_head*L) matrix so all heads' latent scores are a
    # single matmul in-kernel. Latent values are zero; latent queries never
    # reach the output, so neither is needed in the kernel.
    lk = (params['latent_keys'][0] @ params['Wlk'].T)[:, perm]                  # (L, C)
    lk_bd = jnp.zeros((C, n_head * L), jnp.float32)
    for h in range(n_head):
        lk_bd = lk_bd.at[h * hd:(h + 1) * hd, h * L:(h + 1) * L].set(
            lk[:, h * hd:(h + 1) * hd].T)
    lk_bd = lk_bd.astype(jnp.bfloat16)
    HL = n_head * L

    # Compact (T, C) RoPE tables in the per-head [evens|odds] layout (f32:
    # elementwise RoPE/softmax math stays f32; sin is unsigned — sign is in w_qk).
    freqs = 1.0 / (rope_theta ** (jnp.arange(0, hd, 2, dtype=jnp.float32) / hd))
    ang = jnp.arange(T, dtype=jnp.float32)[:, None] * freqs[None, :]            # (T, hd/2)
    cos_t = jnp.tile(jnp.cos(ang), (1, 2 * n_head))                             # (T, C)
    sin_t = jnp.tile(jnp.sin(ang), (1, 2 * n_head))

    # Flatten (B, T, C) -> (B*T, C) outside the kernel (free, contiguous).
    x2 = x.reshape(B * T, C).astype(jnp.bfloat16)

    # VMEM budget: double-buffered operands + in-kernel temporaries, +50% headroom.
    bl, bf, bo = 2, 4, x.dtype.itemsize
    weights = (C * 4 * C + C * C + C * HL + C * C) * bl
    tables = 2 * T * C * bf
    io = R * C * (bl + bo)
    temps = (R * 4 * C * bf + 2 * R * C * (bf + bl) + R * C * (bf + bl)
             + R * HL * bf + T * T * bf
             + 2 * Bb * T * kv_tile * bf + 2 * Bb * T * hd * bf
             + Bb * T * C * bl)
    est = 2 * (weights + tables + io) + temps
    vmem_limit = int(min(max(est * 3 // 2, 32 * 2**20), 96 * 2**20))

    kernel = functools.partial(mla_kernel, n_head=n_head, seq_len=T,
                               kv_tile=kv_tile)

    out2 = pl.pallas_call(
        kernel,
        out_shape=jax.ShapeDtypeStruct((B * T, C), x.dtype),
        grid_spec=pltpu.PrefetchScalarGridSpec(
            num_scalar_prefetch=0,
            grid=(B // Bb,),
            # TODO(synk): mark the six grid-invariant operands below with
            # pipeline_mode=pl.Buffered(1) (single buffer) once verified on the
            # target jax version; default double-buffering only costs VMEM here.
            in_specs=[
                pl.BlockSpec((R, C), lambda b: (b, 0)),            # x rows
                pl.BlockSpec((C, 4 * C), lambda b: (0, 0)),        # Wq|Wq_rot|Wk|Wk_rot
                pl.BlockSpec((C, C), lambda b: (0, 0)),            # Wv
                pl.BlockSpec((C, HL), lambda b: (0, 0)),           # latent keys (blockdiag)
                pl.BlockSpec((T, C), lambda b: (0, 0)),            # cos (T, C)
                pl.BlockSpec((T, C), lambda b: (0, 0)),            # sin (T, C)
                pl.BlockSpec((C, C), lambda b: (0, 0)),            # Wp
            ],
            out_specs=pl.BlockSpec((R, C), lambda b: (b, 0)),
            scratch_shapes=[pltpu.VMEM((Bb, T, C), jnp.bfloat16)],  # attention-out slab
        ),
        compiler_params=pltpu.CompilerParams(
            dimension_semantics=("parallel",),       # batch axis -> both TCs on v7x
            vmem_limit_bytes=vmem_limit),
    )(x2, w_qk, w_v, lk_bd, cos_t, sin_t, w_p)

    return out2.reshape(B, T, C)


# ----------------------------------------------------------------------------
# Pure-JAX reference mirroring the PyTorch forward (for validation).
# ----------------------------------------------------------------------------
def reference_forward(x, params, *, n_head, rope_theta=10000.0):
    B, T, C = x.shape
    H = n_head
    hd = C // H
    L = H // 2

    q = (x @ params['Wq'].T).reshape(B, T, H, hd)
    k = (x @ params['Wk'].T).reshape(B, T, H, hd)
    v = (x @ params['Wv'].T).reshape(B, T, H, hd)

    freqs = 1.0 / (rope_theta ** (jnp.arange(0, hd, 2, dtype=jnp.float32) / hd))
    ang = jnp.arange(T, dtype=jnp.float32)[:, None] * freqs[None, :]
    cos = jnp.cos(ang)[None, :, None, :]
    sin = jnp.sin(ang)[None, :, None, :]

    def rope(z):
        ze = z[..., 0::2]
        zo = z[..., 1::2]
        re = ze * cos - zo * sin
        im = ze * sin + zo * cos
        return jnp.stack([re, im], axis=-1).reshape(z.shape)

    q = rope(q)
    k = rope(k)

    lq = (params['latent_queries'][0] @ params['Wlq'].T).reshape(L, H, hd)
    lk = (params['latent_keys'][0] @ params['Wlk'].T).reshape(L, H, hd)
    lq = jnp.broadcast_to(lq[None], (B, L, H, hd))
    lk = jnp.broadcast_to(lk[None], (B, L, H, hd))

    qf = jnp.concatenate([q, lq], axis=1).transpose(0, 2, 1, 3)
    kf = jnp.concatenate([k, lk], axis=1).transpose(0, 2, 1, 3)
    vf = jnp.concatenate([v, jnp.zeros_like(lq)], axis=1).transpose(0, 2, 1, 3)

    S = T + L
    scores = jnp.einsum('bhqd,bhkd->bhqk', qf, kf) / math.sqrt(hd)
    mask = jnp.ones((S, S), dtype=bool)
    mask = mask.at[:T, :T].set(jnp.tril(jnp.ones((T, T), dtype=bool)))
    scores = jnp.where(mask[None, None], scores, -jnp.inf)
    att = jax.nn.softmax(scores, axis=-1)
    out = jnp.einsum('bhqk,bhkd->bhqd', att, vf)
    out = out[:, :, :T, :].transpose(0, 2, 1, 3).reshape(B, T, C)
    return out @ params['Wp'].T


if __name__ == "__main__":
    # Small config consistent with the module: n_embd=32, n_head=4 ->
    # head_dim=8, n_latents=2, latent_dim=16. Batch=2, seq=8.
    B, T, n_head, C = 2, 8, 4, 32
    hd = C // n_head
    L = n_head // 2
    ld = 2 * hd

    key = jax.random.PRNGKey(0)
    keys = jax.random.split(key, 9)

    def linear_w(k, out_f, in_f):
        bound = 1.0 / math.sqrt(in_f)
        return jax.random.uniform(k, (out_f, in_f), jnp.float32, -bound, bound)

    params = {
        'Wq': linear_w(keys[0], C, C),
        'Wk': linear_w(keys[1], C, C),
        'Wv': linear_w(keys[2], C, C),
        'Wlq': linear_w(keys[3], C, ld),
        'Wlk': linear_w(keys[4], C, ld),
        'Wp': linear_w(keys[5], C, C),
        'latent_queries': jax.random.normal(keys[6], (1, L, ld), jnp.float32)
                          / math.sqrt(ld),
        'latent_keys': jax.random.normal(keys[7], (1, L, ld), jnp.float32)
                       / math.sqrt(ld),
    }
    x = jax.random.normal(keys[8], (B, T, C), jnp.float32)

    out = multi_latent_attention(x, params, n_head=n_head)
    out = jax.block_until_ready(out)

    ref = reference_forward(x, params, n_head=n_head)
    err = float(jnp.max(jnp.abs(out - ref)))
    # MXU operands are bf16 and the softmax denominator uses the approximate
    # (EUP) reciprocal, so the tolerance is loose relative to pure f32.
    assert err < 4e-2, f"max abs err {err}"
    print("KERNEL_OK")
</pallas_src>

<mosaic_0001>
module attributes {stable_mosaic.version = 11 : i64} {
  func.func @mla_kernel(%arg0: i32, %arg1: memref<8x32xbf16, #tpu.memory_space<vmem>>, %arg2: memref<32x128xbf16, #tpu.memory_space<vmem>>, %arg3: memref<32x32xbf16, #tpu.memory_space<vmem>>, %arg4: memref<32x8xbf16, #tpu.memory_space<vmem>>, %arg5: memref<8x32xf32, #tpu.memory_space<vmem>>, %arg6: memref<8x32xf32, #tpu.memory_space<vmem>>, %arg7: memref<32x32xbf16, #tpu.memory_space<vmem>>, %arg8: memref<8x32xf32, #tpu.memory_space<vmem>>, %arg9: memref<1x8x32xbf16, #tpu.memory_space<vmem>>) attributes {dimension_semantics = [#tpu.dimension_semantics<parallel>], iteration_bounds = array<i64: 2>, scalar_prefetch = 0 : i64, scratch_operands = 1 : i64, tpu.core_type = #tpu.core_type<tc>, window_params = [{transform_indices = @transform_0, window_bounds = array<i64: 8, 32>}, {pipeline_mode = #tpu.pipeline_mode<synchronous>, transform_indices = @transform_1, window_bounds = array<i64: 32, 128>}, {pipeline_mode = #tpu.pipeline_mode<synchronous>, transform_indices = @transform_2, window_bounds = array<i64: 32, 32>}, {pipeline_mode = #tpu.pipeline_mode<synchronous>, transform_indices = @transform_3, window_bounds = array<i64: 32, 8>}, {pipeline_mode = #tpu.pipeline_mode<synchronous>, transform_indices = @transform_4, window_bounds = array<i64: 8, 32>}, {pipeline_mode = #tpu.pipeline_mode<synchronous>, transform_indices = @transform_5, window_bounds = array<i64: 8, 32>}, {pipeline_mode = #tpu.pipeline_mode<synchronous>, transform_indices = @transform_6, window_bounds = array<i64: 32, 32>}, {transform_indices = @transform_7, window_bounds = array<i64: 8, 32>}]} {
    %c0 = arith.constant 0 : index
    %c0_0 = arith.constant 0 : index
    %0 = vector.load %arg1[%c0, %c0_0] : memref<8x32xbf16, #tpu.memory_space<vmem>>, vector<8x32xbf16>
    %c0_1 = arith.constant 0 : index
    %c0_2 = arith.constant 0 : index
    %1 = vector.load %arg2[%c0_1, %c0_2] : memref<32x128xbf16, #tpu.memory_space<vmem>>, vector<32x128xbf16>
    %cst = arith.constant dense<0.000000e+00> : vector<8x128xf32>
    %2 = tpu.matmul %0, %1, %cst {dimension_numbers = #tpu.dot_dimension_numbers<[1], [0], [0], [1], [0, 0, 1, 1], [], []>} : vector<8x32xbf16>, vector<32x128xbf16>, vector<8x128xf32> -> vector<8x128xf32>
    %c0_3 = arith.constant 0 : index
    %c0_4 = arith.constant 0 : index
    %3 = vector.load %arg3[%c0_3, %c0_4] : memref<32x32xbf16, #tpu.memory_space<vmem>>, vector<32x32xbf16>
    %cst_5 = arith.constant dense<0.000000e+00> : vector<8x32xf32>
    %4 = tpu.matmul %0, %3, %cst_5 {dimension_numbers = #tpu.dot_dimension_numbers<[1], [0], [0], [1], [0, 0, 1, 1], [], []>} : vector<8x32xbf16>, vector<32x32xbf16>, vector<8x32xf32> -> vector<8x32xf32>
    %5 = arith.truncf %4 : vector<8x32xf32> to vector<8x32xbf16>
    %6 = vector.shape_cast %5 : vector<8x32xbf16> to vector<1x8x32xbf16>
    %c0_6 = arith.constant 0 : index
    %c0_7 = arith.constant 0 : index
    %7 = vector.load %arg5[%c0_6, %c0_7] : memref<8x32xf32, #tpu.memory_space<vmem>>, vector<8x32xf32>
    %c0_8 = arith.constant 0 : index
    %c0_9 = arith.constant 0 : index
    %8 = vector.load %arg6[%c0_8, %c0_9] : memref<8x32xf32, #tpu.memory_space<vmem>>, vector<8x32xf32>
    %9 = vector.extract_strided_slice %2 {offsets = [0, 0], sizes = [8, 32], strides = [1, 1]} : vector<8x128xf32> to vector<8x32xf32>
    %10 = arith.mulf %9, %7 : vector<8x32xf32>
    %11 = vector.extract_strided_slice %2 {offsets = [0, 32], sizes = [8, 32], strides = [1, 1]} : vector<8x128xf32> to vector<8x32xf32>
    %12 = arith.mulf %11, %8 : vector<8x32xf32>
    %13 = arith.addf %10, %12 : vector<8x32xf32>
    %14 = arith.truncf %13 : vector<8x32xf32> to vector<8x32xbf16>
    %15 = vector.extract_strided_slice %2 {offsets = [0, 64], sizes = [8, 32], strides = [1, 1]} : vector<8x128xf32> to vector<8x32xf32>
    %16 = arith.mulf %15, %7 : vector<8x32xf32>
    %17 = vector.extract_strided_slice %2 {offsets = [0, 96], sizes = [8, 32], strides = [1, 1]} : vector<8x128xf32> to vector<8x32xf32>
    %18 = arith.mulf %17, %8 : vector<8x32xf32>
    %19 = arith.addf %16, %18 : vector<8x32xf32>
    %20 = arith.truncf %19 : vector<8x32xf32> to vector<8x32xbf16>
    %c0_10 = arith.constant 0 : index
    %c0_11 = arith.constant 0 : index
    %21 = vector.load %arg4[%c0_10, %c0_11] : memref<32x8xbf16, #tpu.memory_space<vmem>>, vector<32x8xbf16>
    %cst_12 = arith.constant dense<0.000000e+00> : vector<8x8xf32>
    %22 = tpu.matmul %14, %21, %cst_12 {dimension_numbers = #tpu.dot_dimension_numbers<[1], [0], [0], [1], [0, 0, 1, 1], [], []>} : vector<8x32xbf16>, vector<32x8xbf16>, vector<8x8xf32> -> vector<8x8xf32>
    %23 = vector.shape_cast %22 : vector<8x8xf32> to vector<1x8x8xf32>
    %24 = vector.shape_cast %14 : vector<8x32xbf16> to vector<1x8x32xbf16>
    %25 = vector.shape_cast %20 : vector<8x32xbf16> to vector<1x8x32xbf16>
    %26 = tpu.iota {dimensions = array<i32: 0>} : vector<8x8xi32>
    %27 = tpu.iota {dimensions = array<i32: 1>} : vector<8x8xi32>
    %28 = arith.cmpi sle, %27, %26 : vector<8x8xi32>
    %cst_13 = arith.constant 0.000000e+00 : f32
    %cst_14 = arith.constant -1.000000e+30 : f32
    %29 = vector.broadcast %cst_13 : f32 to vector<8x8xf32>
    %30 = vector.broadcast %cst_14 : f32 to vector<8x8xf32>
    %31 = arith.select %28, %29, %30 : vector<8x8xi1>, vector<8x8xf32>
    %32 = vector.extract_strided_slice %24 {offsets = [0, 0, 0], sizes = [1, 8, 8], strides = [1, 1, 1]} : vector<1x8x32xbf16> to vector<1x8x8xbf16>
    %33 = vector.extract_strided_slice %23 {offsets = [0, 0, 0], sizes = [1, 8, 2], strides = [1, 1, 1]} : vector<1x8x8xf32> to vector<1x8x2xf32>
    %cst_15 = arith.constant dense<0xFF800000> : vector<1x8xf32>
    %34 = vector.multi_reduction <maximumf>, %33, %cst_15 [2] : vector<1x8x2xf32> to vector<1x8xf32>
    %35 = vector.shape_cast %34 : vector<1x8xf32> to vector<1x8x1xf32>
    %36 = vector.broadcast %35 : vector<1x8x1xf32> to vector<1x8x2xf32>
    %37 = arith.subf %33, %36 : vector<1x8x2xf32>
    %38 = math.exp %37 : vector<1x8x2xf32>
    %cst_16 = arith.constant dense<0.000000e+00> : vector<1x8xf32>
    %39 = vector.multi_reduction <add>, %38, %cst_16 [2] : vector<1x8x2xf32> to vector<1x8xf32>
    %40 = vector.shape_cast %39 : vector<1x8xf32> to vector<1x8x1xf32>
    %cst_17 = arith.constant 0.000000e+00 : f32
    %41 = vector.broadcast %cst_17 : f32 to vector<1x8x8xf32>
    %42 = vector.extract_strided_slice %25 {offsets = [0, 0, 0], sizes = [1, 8, 8], strides = [1, 1, 1]} : vector<1x8x32xbf16> to vector<1x8x8xbf16>
    %43 = vector.extract_strided_slice %6 {offsets = [0, 0, 0], sizes = [1, 8, 8], strides = [1, 1, 1]} : vector<1x8x32xbf16> to vector<1x8x8xbf16>
    "tpu.trace_start"() <{level = 10 : i32, message = "btd,bsd->bts"}> : () -> ()
    %cst_18 = arith.constant dense<0.000000e+00> : vector<1x8x8xf32>
    %44 = tpu.matmul %32, %42, %cst_18 {dimension_numbers = #tpu.dot_dimension_numbers<[2], [2], [1], [1], [0, 0, 0, 1, 1, 1], [0], [0]>} : vector<1x8x8xbf16>, vector<1x8x8xbf16>, vector<1x8x8xf32> -> vector<1x8x8xf32>
    "tpu.trace_stop"() : () -> ()
    %45 = vector.shape_cast %31 : vector<8x8xf32> to vector<1x8x8xf32>
    %46 = arith.addf %44, %45 : vector<1x8x8xf32>
    %cst_19 = arith.constant dense<0xFF800000> : vector<1x8xf32>
    %47 = vector.multi_reduction <maximumf>, %46, %cst_19 [2] : vector<1x8x8xf32> to vector<1x8xf32>
    %48 = vector.shape_cast %47 : vector<1x8xf32> to vector<1x8x1xf32>
    %49 = arith.maximumf %35, %48 : vector<1x8x1xf32>
    %50 = arith.subf %35, %49 : vector<1x8x1xf32>
    %51 = math.exp %50 : vector<1x8x1xf32>
    %52 = vector.broadcast %49 : vector<1x8x1xf32> to vector<1x8x8xf32>
    %53 = arith.subf %46, %52 : vector<1x8x8xf32>
    %54 = math.exp %53 : vector<1x8x8xf32>
    %55 = arith.mulf %51, %40 : vector<1x8x1xf32>
    %cst_20 = arith.constant dense<0.000000e+00> : vector<1x8xf32>
    %56 = vector.multi_reduction <add>, %54, %cst_20 [2] : vector<1x8x8xf32> to vector<1x8xf32>
    %57 = vector.shape_cast %56 : vector<1x8xf32> to vector<1x8x1xf32>
    %58 = arith.addf %55, %57 : vector<1x8x1xf32>
    %59 = vector.broadcast %51 : vector<1x8x1xf32> to vector<1x8x8xf32>
    %60 = arith.mulf %59, %41 : vector<1x8x8xf32>
    %61 = arith.truncf %54 : vector<1x8x8xf32> to vector<1x8x8xbf16>
    "tpu.trace_start"() <{level = 10 : i32, message = "bts,bsd->btd"}> : () -> ()
    %cst_21 = arith.constant dense<0.000000e+00> : vector<1x8x8xf32>
    %62 = tpu.matmul %61, %43, %cst_21 {dimension_numbers = #tpu.dot_dimension_numbers<[2], [1], [1], [2], [0, 0, 0, 1, 1, 2], [0], [0]>} : vector<1x8x8xbf16>, vector<1x8x8xbf16>, vector<1x8x8xf32> -> vector<1x8x8xf32>
    "tpu.trace_stop"() : () -> ()
    %63 = arith.addf %60, %62 : vector<1x8x8xf32>
    %64 = tpu.reciprocal %58 {approx = true} : vector<1x8x1xf32> -> vector<1x8x1xf32>
    %65 = vector.broadcast %64 : vector<1x8x1xf32> to vector<1x8x8xf32>
    %66 = arith.mulf %63, %65 : vector<1x8x8xf32>
    %67 = arith.truncf %66 : vector<1x8x8xf32> to vector<1x8x8xbf16>
    %c0_22 = arith.constant 0 : index
    %c0_23 = arith.constant 0 : index
    %c0_24 = arith.constant 0 : index
    %68 = vector.load %arg9[%c0_22, %c0_23, %c0_24] : memref<1x8x32xbf16, #tpu.memory_space<vmem>>, vector<1x8x8xbf16>
    tpu.vector_store %arg9[%c0_22, %c0_23, %c0_24], %67 {strides = array<i32>} : memref<1x8x32xbf16, #tpu.memory_space<vmem>>, vector<1x8x8xbf16>,
    %69 = vector.extract_strided_slice %24 {offsets = [0, 0, 8], sizes = [1, 8, 8], strides = [1, 1, 1]} : vector<1x8x32xbf16> to vector<1x8x8xbf16>
    %70 = vector.extract_strided_slice %23 {offsets = [0, 0, 2], sizes = [1, 8, 2], strides = [1, 1, 1]} : vector<1x8x8xf32> to vector<1x8x2xf32>
    %cst_25 = arith.constant dense<0xFF800000> : vector<1x8xf32>
    %71 = vector.multi_reduction <maximumf>, %70, %cst_25 [2] : vector<1x8x2xf32> to vector<1x8xf32>
    %72 = vector.shape_cast %71 : vector<1x8xf32> to vector<1x8x1xf32>
    %73 = vector.broadcast %72 : vector<1x8x1xf32> to vector<1x8x2xf32>
    %74 = arith.subf %70, %73 : vector<1x8x2xf32>
    %75 = math.exp %74 : vector<1x8x2xf32>
    %cst_26 = arith.constant dense<0.000000e+00> : vector<1x8xf32>
    %76 = vector.multi_reduction <add>, %75, %cst_26 [2] : vector<1x8x2xf32> to vector<1x8xf32>
    %77 = vector.shape_cast %76 : vector<1x8xf32> to vector<1x8x1xf32>
    %cst_27 = arith.constant 0.000000e+00 : f32
    %78 = vector.broadcast %cst_27 : f32 to vector<1x8x8xf32>
    %79 = vector.extract_strided_slice %25 {offsets = [0, 0, 8], sizes = [1, 8, 8], strides = [1, 1, 1]} : vector<1x8x32xbf16> to vector<1x8x8xbf16>
    %80 = vector.extract_strided_slice %6 {offsets = [0, 0, 8], sizes = [1, 8, 8], strides = [1, 1, 1]} : vector<1x8x32xbf16> to vector<1x8x8xbf16>
    "tpu.trace_start"() <{level = 10 : i32, message = "btd,bsd->bts"}> : () -> ()
    %cst_28 = arith.constant dense<0.000000e+00> : vector<1x8x8xf32>
    %81 = tpu.matmul %69, %79, %cst_28 {dimension_numbers = #tpu.dot_dimension_numbers<[2], [2], [1], [1], [0, 0, 0, 1, 1, 1], [0], [0]>} : vector<1x8x8xbf16>, vector<1x8x8xbf16>, vector<1x8x8xf32> -> vector<1x8x8xf32>
    "tpu.trace_stop"() : () -> ()
    %82 = vector.shape_cast %31 : vector<8x8xf32> to vector<1x8x8xf32>
    %83 = arith.addf %81, %82 : vector<1x8x8xf32>
    %cst_29 = arith.constant dense<0xFF800000> : vector<1x8xf32>
    %84 = vector.multi_reduction <maximumf>, %83, %cst_29 [2] : vector<1x8x8xf32> to vector<1x8xf32>
    %85 = vector.shape_cast %84 : vector<1x8xf32> to vector<1x8x1xf32>
    %86 = arith.maximumf %72, %85 : vector<1x8x1xf32>
    %87 = arith.subf %72, %86 : vector<1x8x1xf32>
    %88 = math.exp %87 : vector<1x8x1xf32>
    %89 = vector.broadcast %86 : vector<1x8x1xf32> to vector<1x8x8xf32>
    %90 = arith.subf %83, %89 : vector<1x8x8xf32>
    %91 = math.exp %90 : vector<1x8x8xf32>
    %92 = arith.mulf %88, %77 : vector<1x8x1xf32>
    %cst_30 = arith.constant dense<0.000000e+00> : vector<1x8xf32>
    %93 = vector.multi_reduction <add>, %91, %cst_30 [2] : vector<1x8x8xf32> to vector<1x8xf32>
    %94 = vector.shape_cast %93 : vector<1x8xf32> to vector<1x8x1xf32>
    %95 = arith.addf %92, %94 : vector<1x8x1xf32>
    %96 = vector.broadcast %88 : vector<1x8x1xf32> to vector<1x8x8xf32>
    %97 = arith.mulf %96, %78 : vector<1x8x8xf32>
    %98 = arith.truncf %91 : vector<1x8x8xf32> to vector<1x8x8xbf16>
    "tpu.trace_start"() <{level = 10 : i32, message = "bts,bsd->btd"}> : () -> ()
    %cst_31 = arith.constant dense<0.000000e+00> : vector<1x8x8xf32>
    %99 = tpu.matmul %98, %80, %cst_31 {dimension_numbers = #tpu.dot_dimension_numbers<[2], [1], [1], [2], [0, 0, 0, 1, 1, 2], [0], [0]>} : vector<1x8x8xbf16>, vector<1x8x8xbf16>, vector<1x8x8xf32> -> vector<1x8x8xf32>
    "tpu.trace_stop"() : () -> ()
    %100 = arith.addf %97, %99 : vector<1x8x8xf32>
    %101 = tpu.reciprocal %95 {approx = true} : vector<1x8x1xf32> -> vector<1x8x1xf32>
    %102 = vector.broadcast %101 : vector<1x8x1xf32> to vector<1x8x8xf32>
    %103 = arith.mulf %100, %102 : vector<1x8x8xf32>
    %104 = arith.truncf %103 : vector<1x8x8xf32> to vector<1x8x8xbf16>
    %c0_32 = arith.constant 0 : index
    %c0_33 = arith.constant 0 : index
    %c8 = arith.constant 8 : index
    %105 = vector.load %arg9[%c0_32, %c0_33, %c8] : memref<1x8x32xbf16, #tpu.memory_space<vmem>>, vector<1x8x8xbf16>
    tpu.vector_store %arg9[%c0_32, %c0_33, %c8], %104 {strides = array<i32>} : memref<1x8x32xbf16, #tpu.memory_space<vmem>>, vector<1x8x8xbf16>,
    %106 = vector.extract_strided_slice %24 {offsets = [0, 0, 16], sizes = [1, 8, 8], strides = [1, 1, 1]} : vector<1x8x32xbf16> to vector<1x8x8xbf16>
    %107 = vector.extract_strided_slice %23 {offsets = [0, 0, 4], sizes = [1, 8, 2], strides = [1, 1, 1]} : vector<1x8x8xf32> to vector<1x8x2xf32>
    %cst_34 = arith.constant dense<0xFF800000> : vector<1x8xf32>
    %108 = vector.multi_reduction <maximumf>, %107, %cst_34 [2] : vector<1x8x2xf32> to vector<1x8xf32>
    %109 = vector.shape_cast %108 : vector<1x8xf32> to vector<1x8x1xf32>
    %110 = vector.broadcast %109 : vector<1x8x1xf32> to vector<1x8x2xf32>
    %111 = arith.subf %107, %110 : vector<1x8x2xf32>
    %112 = math.exp %111 : vector<1x8x2xf32>
    %cst_35 = arith.constant dense<0.000000e+00> : vector<1x8xf32>
    %113 = vector.multi_reduction <add>, %112, %cst_35 [2] : vector<1x8x2xf32> to vector<1x8xf32>
    %114 = vector.shape_cast %113 : vector<1x8xf32> to vector<1x8x1xf32>
    %cst_36 = arith.constant 0.000000e+00 : f32
    %115 = vector.broadcast %cst_36 : f32 to vector<1x8x8xf32>
    %116 = vector.extract_strided_slice %25 {offsets = [0, 0, 16], sizes = [1, 8, 8], strides = [1, 1, 1]} : vector<1x8x32xbf16> to vector<1x8x8xbf16>
    %117 = vector.extract_strided_slice %6 {offsets = [0, 0, 16], sizes = [1, 8, 8], strides = [1, 1, 1]} : vector<1x8x32xbf16> to vector<1x8x8xbf16>
    "tpu.trace_start"() <{level = 10 : i32, message = "btd,bsd->bts"}> : () -> ()
    %cst_37 = arith.constant dense<0.000000e+00> : vector<1x8x8xf32>
    %118 = tpu.matmul %106, %116, %cst_37 {dimension_numbers = #tpu.dot_dimension_numbers<[2], [2], [1], [1], [0, 0, 0, 1, 1, 1], [0], [0]>} : vector<1x8x8xbf16>, vector<1x8x8xbf16>, vector<1x8x8xf32> -> vector<1x8x8xf32>
    "tpu.trace_stop"() : () -> ()
    %119 = vector.shape_cast %31 : vector<8x8xf32> to vector<1x8x8xf32>
    %120 = arith.addf %118, %119 : vector<1x8x8xf32>
    %cst_38 = arith.constant dense<0xFF800000> : vector<1x8xf32>
    %121 = vector.multi_reduction <maximumf>, %120, %cst_38 [2] : vector<1x8x8xf32> to vector<1x8xf32>
    %122 = vector.shape_cast %121 : vector<1x8xf32> to vector<1x8x1xf32>
    %123 = arith.maximumf %109, %122 : vector<1x8x1xf32>
    %124 = arith.subf %109, %123 : vector<1x8x1xf32>
    %125 = math.exp %124 : vector<1x8x1xf32>
    %126 = vector.broadcast %123 : vector<1x8x1xf32> to vector<1x8x8xf32>
    %127 = arith.subf %120, %126 : vector<1x8x8xf32>
    %128 = math.exp %127 : vector<1x8x8xf32>
    %129 = arith.mulf %125, %114 : vector<1x8x1xf32>
    %cst_39 = arith.constant dense<0.000000e+00> : vector<1x8xf32>
    %130 = vector.multi_reduction <add>, %128, %cst_39 [2] : vector<1x8x8xf32> to vector<1x8xf32>
    %131 = vector.shape_cast %130 : vector<1x8xf32> to vector<1x8x1xf32>
    %132 = arith.addf %129, %131 : vector<1x8x1xf32>
    %133 = vector.broadcast %125 : vector<1x8x1xf32> to vector<1x8x8xf32>
    %134 = arith.mulf %133, %115 : vector<1x8x8xf32>
    %135 = arith.truncf %128 : vector<1x8x8xf32> to vector<1x8x8xbf16>
    "tpu.trace_start"() <{level = 10 : i32, message = "bts,bsd->btd"}> : () -> ()
    %cst_40 = arith.constant dense<0.000000e+00> : vector<1x8x8xf32>
    %136 = tpu.matmul %135, %117, %cst_40 {dimension_numbers = #tpu.dot_dimension_numbers<[2], [1], [1], [2], [0, 0, 0, 1, 1, 2], [0], [0]>} : vector<1x8x8xbf16>, vector<1x8x8xbf16>, vector<1x8x8xf32> -> vector<1x8x8xf32>
    "tpu.trace_stop"() : () -> ()
    %137 = arith.addf %134, %136 : vector<1x8x8xf32>
    %138 = tpu.reciprocal %132 {approx = true} : vector<1x8x1xf32> -> vector<1x8x1xf32>
    %139 = vector.broadcast %138 : vector<1x8x1xf32> to vector<1x8x8xf32>
    %140 = arith.mulf %137, %139 : vector<1x8x8xf32>
    %141 = arith.truncf %140 : vector<1x8x8xf32> to vector<1x8x8xbf16>
    %c0_41 = arith.constant 0 : index
    %c0_42 = arith.constant 0 : index
    %c16 = arith.constant 16 : index
    %142 = vector.load %arg9[%c0_41, %c0_42, %c16] : memref<1x8x32xbf16, #tpu.memory_space<vmem>>, vector<1x8x8xbf16>
    tpu.vector_store %arg9[%c0_41, %c0_42, %c16], %141 {strides = array<i32>} : memref<1x8x32xbf16, #tpu.memory_space<vmem>>, vector<1x8x8xbf16>,
    %143 = vector.extract_strided_slice %24 {offsets = [0, 0, 24], sizes = [1, 8, 8], strides = [1, 1, 1]} : vector<1x8x32xbf16> to vector<1x8x8xbf16>
    %144 = vector.extract_strided_slice %23 {offsets = [0, 0, 6], sizes = [1, 8, 2], strides = [1, 1, 1]} : vector<1x8x8xf32> to vector<1x8x2xf32>
    %cst_43 = arith.constant dense<0xFF800000> : vector<1x8xf32>
    %145 = vector.multi_reduction <maximumf>, %144, %cst_43 [2] : vector<1x8x2xf32> to vector<1x8xf32>
    %146 = vector.shape_cast %145 : vector<1x8xf32> to vector<1x8x1xf32>
    %147 = vector.broadcast %146 : vector<1x8x1xf32> to vector<1x8x2xf32>
    %148 = arith.subf %144, %147 : vector<1x8x2xf32>
    %149 = math.exp %148 : vector<1x8x2xf32>
    %cst_44 = arith.constant dense<0.000000e+00> : vector<1x8xf32>
    %150 = vector.multi_reduction <add>, %149, %cst_44 [2] : vector<1x8x2xf32> to vector<1x8xf32>
    %151 = vector.shape_cast %150 : vector<1x8xf32> to vector<1x8x1xf32>
    %cst_45 = arith.constant 0.000000e+00 : f32
    %152 = vector.broadcast %cst_45 : f32 to vector<1x8x8xf32>
    %153 = vector.extract_strided_slice %25 {offsets = [0, 0, 24], sizes = [1, 8, 8], strides = [1, 1, 1]} : vector<1x8x32xbf16> to vector<1x8x8xbf16>
    %154 = vector.extract_strided_slice %6 {offsets = [0, 0, 24], sizes = [1, 8, 8], strides = [1, 1, 1]} : vector<1x8x32xbf16> to vector<1x8x8xbf16>
    "tpu.trace_start"() <{level = 10 : i32, message = "btd,bsd->bts"}> : () -> ()
    %cst_46 = arith.constant dense<0.000000e+00> : vector<1x8x8xf32>
    %155 = tpu.matmul %143, %153, %cst_46 {dimension_numbers = #tpu.dot_dimension_numbers<[2], [2], [1], [1], [0, 0, 0, 1, 1, 1], [0], [0]>} : vector<1x8x8xbf16>, vector<1x8x8xbf16>, vector<1x8x8xf32> -> vector<1x8x8xf32>
    "tpu.trace_stop"() : () -> ()
    %156 = vector.shape_cast %31 : vector<8x8xf32> to vector<1x8x8xf32>
    %157 = arith.addf %155, %156 : vector<1x8x8xf32>
    %cst_47 = arith.constant dense<0xFF800000> : vector<1x8xf32>
    %158 = vector.multi_reduction <maximumf>, %157, %cst_47 [2] : vector<1x8x8xf32> to vector<1x8xf32>
    %159 = vector.shape_cast %158 : vector<1x8xf32> to vector<1x8x1xf32>
    %160 = arith.maximumf %146, %159 : vector<1x8x1xf32>
    %161 = arith.subf %146, %160 : vector<1x8x1xf32>
    %162 = math.exp %161 : vector<1x8x1xf32>
    %163 = vector.broadcast %160 : vector<1x8x1xf32> to vector<1x8x8xf32>
    %164 = arith.subf %157, %163 : vector<1x8x8xf32>
    %165 = math.exp %164 : vector<1x8x8xf32>
    %166 = arith.mulf %162, %151 : vector<1x8x1xf32>
    %cst_48 = arith.constant dense<0.000000e+00> : vector<1x8xf32>
    %167 = vector.multi_reduction <add>, %165, %cst_48 [2] : vector<1x8x8xf32> to vector<1x8xf32>
    %168 = vector.shape_cast %167 : vector<1x8xf32> to vector<1x8x1xf32>
    %169 = arith.addf %166, %168 : vector<1x8x1xf32>
    %170 = vector.broadcast %162 : vector<1x8x1xf32> to vector<1x8x8xf32>
    %171 = arith.mulf %170, %152 : vector<1x8x8xf32>
    %172 = arith.truncf %165 : vector<1x8x8xf32> to vector<1x8x8xbf16>
    "tpu.trace_start"() <{level = 10 : i32, message = "bts,bsd->btd"}> : () -> ()
    %cst_49 = arith.constant dense<0.000000e+00> : vector<1x8x8xf32>
    %173 = tpu.matmul %172, %154, %cst_49 {dimension_numbers = #tpu.dot_dimension_numbers<[2], [1], [1], [2], [0, 0, 0, 1, 1, 2], [0], [0]>} : vector<1x8x8xbf16>, vector<1x8x8xbf16>, vector<1x8x8xf32> -> vector<1x8x8xf32>
    "tpu.trace_stop"() : () -> ()
    %174 = arith.addf %171, %173 : vector<1x8x8xf32>
    %175 = tpu.reciprocal %169 {approx = true} : vector<1x8x1xf32> -> vector<1x8x1xf32>
    %176 = vector.broadcast %175 : vector<1x8x1xf32> to vector<1x8x8xf32>
    %177 = arith.mulf %174, %176 : vector<1x8x8xf32>
    %178 = arith.truncf %177 : vector<1x8x8xf32> to vector<1x8x8xbf16>
    %c0_50 = arith.constant 0 : index
    %c0_51 = arith.constant 0 : index
    %c24 = arith.constant 24 : index
    %179 = vector.load %arg9[%c0_50, %c0_51, %c24] : memref<1x8x32xbf16, #tpu.memory_space<vmem>>, vector<1x8x8xbf16>
    tpu.vector_store %arg9[%c0_50, %c0_51, %c24], %178 {strides = array<i32>} : memref<1x8x32xbf16, #tpu.memory_space<vmem>>, vector<1x8x8xbf16>,
    %c0_52 = arith.constant 0 : index
    %c0_53 = arith.constant 0 : index
    %c0_54 = arith.constant 0 : index
    %180 = vector.load %arg9[%c0_52, %c0_53, %c0_54] : memref<1x8x32xbf16, #tpu.memory_space<vmem>>, vector<1x8x32xbf16>
    %181 = vector.shape_cast %180 : vector<1x8x32xbf16> to vector<8x32xbf16>
    %c0_55 = arith.constant 0 : index
    %c0_56 = arith.constant 0 : index
    %182 = vector.load %arg7[%c0_55, %c0_56] : memref<32x32xbf16, #tpu.memory_space<vmem>>, vector<32x32xbf16>
    %cst_57 = arith.constant dense<0.000000e+00> : vector<8x32xf32>
    %183 = tpu.matmul %181, %182, %cst_57 {dimension_numbers = #tpu.dot_dimension_numbers<[1], [0], [0], [1], [0, 0, 1, 1], [], []>} : vector<8x32xbf16>, vector<32x32xbf16>, vector<8x32xf32> -> vector<8x32xf32>
    %c0_58 = arith.constant 0 : index
    %c0_59 = arith.constant 0 : index
    %184 = vector.load %arg8[%c0_58, %c0_59] : memref<8x32xf32, #tpu.memory_space<vmem>>, vector<8x32xf32>
    tpu.vector_store %arg8[%c0_58, %c0_59], %183 {strides = array<i32>} : memref<8x32xf32, #tpu.memory_space<vmem>>, vector<8x32xf32>,
    return
  }
  func.func @transform_0(%arg0: i32) -> (i32, i32) {
    %c0_i32 = arith.constant 0 : i32
    %c0_i32_0 = arith.constant 0 : i32
    return %arg0, %c0_i32 : i32, i32
  }
  func.func @transform_1(%arg0: i32) -> (i32, i32) {
    %c0_i32 = arith.constant 0 : i32
    %c0_i32_0 = arith.constant 0 : i32
    %c0_i32_1 = arith.constant 0 : i32
    return %c0_i32, %c0_i32_0 : i32, i32
  }
  func.func @transform_2(%arg0: i32) -> (i32, i32) {
    %c0_i32 = arith.constant 0 : i32
    %c0_i32_0 = arith.constant 0 : i32
    %c0_i32_1 = arith.constant 0 : i32
    return %c0_i32, %c0_i32_0 : i32, i32
  }
  func.func @transform_3(%arg0: i32) -> (i32, i32) {
    %c0_i32 = arith.constant 0 : i32
    %c0_i32_0 = arith.constant 0 : i32
    %c0_i32_1 = arith.constant 0 : i32
    return %c0_i32, %c0_i32_0 : i32, i32
  }
  func.func @transform_4(%arg0: i32) -> (i32, i32) {
    %c0_i32 = arith.constant 0 : i32
    %c0_i32_0 = arith.constant 0 : i32
    %c0_i32_1 = arith.constant 0 : i32
    return %c0_i32, %c0_i32_0 : i32, i32
  }
  func.func @transform_5(%arg0: i32) -> (i32, i32) {
    %c0_i32 = arith.constant 0 : i32
    %c0_i32_0 = arith.constant 0 : i32
    %c0_i32_1 = arith.constant 0 : i32
    return %c0_i32, %c0_i32_0 : i32, i32
  }
  func.func @transform_6(%arg0: i32) -> (i32, i32) {
    %c0_i32 = arith.constant 0 : i32
    %c0_i32_0 = arith.constant 0 : i32
    %c0_i32_1 = arith.constant 0 : i32
    return %c0_i32, %c0_i32_0 : i32, i32
  }
  func.func @transform_7(%arg0: i32) -> (i32, i32) {
    %c0_i32 = arith.constant 0 : i32
    %c0_i32_0 = arith.constant 0 : i32
    return %arg0, %c0_i32 : i32, i32
  }
}

</mosaic_0001>

<bundles_post_ra>
// kernel: tpu_custom_call.1
= control target key start
LH: loop header
LB: loop body
LE: loop exit
PB: predicated region body
PF: predicated region fallthrough
CT: control target
= control target key end

     0   :  { %s2152_s0 = inlined_call_operand.hbm [shape: bf16[16,32], index: 0, kind: input, shape index: {}]   ;;  %s2153_s1 = inlined_call_operand.vmem [shape: bf16[32,128], index: 1, kind: input, shape index: {}]   ;;  %s2154_s2 = inlined_call_operand.hbm [shape: bf16[32,32], index: 2, kind: input, shape index: {}]   ;;  %s2155_s3 = inlined_call_operand.vmem [shape: bf16[32,8], index: 3, kind: input, shape index: {}]   ;;  %s2156_s4 = inlined_call_operand.vmem [shape: f32[8,32], index: 4, kind: input, shape index: {}]   ;;  %s2157_s5 = inlined_call_operand.hbm [shape: f32[8,32], index: 5, kind: input, shape index: {}]   ;;  %s2158_s6 = inlined_call_operand.hbm [shape: bf16[32,32], index: 6, kind: input, shape index: {}]   ;;  %s2159_s7 = inlined_call_operand.hbm [shape: f32[16,32], index: 7, kind: output, shape index: {}]  }
   0x1   :  { %2164 = sst [smem:[#allocation16_spill]] %s2154_s2 }
   0x2   :  { %2165 = sst [smem:[#allocation17_spill]] %s2157_s5 }
   0x3   :  { %12 = vsyncpa [#allocation4], 0 }
   0x4   :  { %14 = vsyncpa [#allocation4 + $0x1], 0 }
   0x5   :  { %15 = vsyncpa [#allocation7], 0 }
   0x6   :  { %16 = vsyncpa [#allocation10], 0 }
   0x7   :  { %17 = vsyncpa [#allocation5], 0 }
   0x8   :  { %19 = vsyncpa [#allocation5 + $0x1], 0  ;;  %s1811_s24 = smov 0   ;;  %s1813_s25 = smov 0  }
   0x9   :  { %s1815_s26 = smov 0   ;;  %s1817_s27 = smov 0  }
   0xa LB: > { %s1832_s28 = sadd.s32 4294967295, %s1744_s27   ;;  %s1277_s29 = sadd.s32 4294967294, %s1744_s27   ;;  %s1744_s27 = sphi %s1817_s27, %s2187_s27   ;;  %s1740_s26 = sphi %s1815_s26, %s2186_s26   ;;  %s1736_s25 = sphi %s1813_s25, %s2185_s25   ;;  %s1732_s24 = sphi %s1811_s24, %s2184_s24  }
   0xb   : > { %p45_p0 = scmp.ne.s32.totalorder %s1736_s25, %s1732_s24  ;;  %p2160_p1 = scmp.eq.s32.totalorder %s1832_s28, 0 }
   0xc   : > { %p201_p3 = scmp.eq.s32.totalorder %s1277_s29, 1  ;;  %p1278_p5 = scmp.ge.s32.totalorder %s1744_s27, 1 }
   0xd   : > { %p1841_p4 = por %p2160_p1, %p45_p0  ;;  %p208_p7 = scmp.lt.s32.totalorder %s1744_s27, 3 }
   0xe   : > { %p1846_p6 = por %p201_p3, %p45_p0  ;;  %s1746_s10 = smov [#allocation6]  }
   0xf   : > { %s2166_s30 = scalar_select %p1841_p4, 1, 0 }
  0x10   : > { %s2167_s8 = scalar_select %p1846_p6, 1, 0 }
  0x11   : > { %p1851_p8 = pnand %p1278_p5, %p208_p7  ;;  %s223_s11 = sshll.u32 %s1746_s10, 4  ;;  %s224_s11 = int_to_ptr.vmem [resolvable:$true] %s223_s11 }
  0x12   : > { %s1747_s13 = smov [#allocation8]   ;;  %s1748_s15 = smov [#allocation9]  }
  0x13   : > { %s2168_s9 = scalar_select %p1851_p8, 1, 0 }
  0x14   : > { %p1445_p9 = pneg %p1851_p8  ;;  %s243_s14 = sshll.u32 %s1747_s13, 4  ;;  %s244_s14 = int_to_ptr.vmem [resolvable:$true] %s243_s14 }
  0x15   : > { %s253_s16 = sshll.u32 %s1748_s15, 4  ;;  %s1577_s17 = scalar_lea.vmem %s224_s11, 256  ;;  %s254_s16 = int_to_ptr.vmem [resolvable:$true] %s253_s16 }
  0x16   : > { %p1860_p11 = pnand %p1445_p9, %p2160_p1  ;;  %p1578_p13 = scmp.ne.s32.totalorder %s224_s11, %s1577_s17 }
  0x17   : > { %p1585_p5 = scmp.lt.s32.totalorder %s224_s11, %s224_s11  ;;  %p1586_p7 = scmp.lt.s32.totalorder %s1577_s17, %s1577_s17 }
  0x18   : > { %p1568_p12 = pneg %p1860_p11 }
  0x19   : > { %p1587_p9 = por %p1586_p7, %p1585_p5 }
  0x1a   : > { %p1580_p0 = pnand %p1578_p13, %p1568_p12 }
  0x1c   : > { %p1581_p3 = pneg %p1580_p0 }
  0x1e   : > { %p1588_p10 = pnand %p1587_p9, %p1581_p3 }
  0x20   : > { %1591 = shalt.err (!%p1588_p10)
}
  0x21   : > { %s1749_s18 = smov 64   ;;  %s1750_s19 = smov 4  }
  0x22   : > { %s2170_s2 = sld [smem:[#allocation16_spill]]  ;;  %s1603_s22 = scalar_lea.vmem %s244_s14, 128 }
  0x23   : > { %p1604_p1 = scmp.ne.s32.totalorder %s244_s14, %s1603_s22  ;;  %p1611_p2 = scmp.lt.s32.totalorder %s244_s14, %s244_s14 }
  0x24   : > { %p1612_p6 = scmp.lt.s32.totalorder %s1603_s22, %s1603_s22 }
  0x25   : > { %p1606_p13 = pnand %p1604_p1, %p1568_p12 }
  0x26   : > { %p1613_p5 = por %p1612_p6, %p1611_p2 }
  0x27   : > { %p1607_p0 = pneg %p1606_p13 }
  0x28   : > { %1448 = dma.hbm_to_vmem [thread:$0]  (!%p1860_p11), %s2170_s2, 256, %s224_s11, [#allocation7], %s1749_s18, %s1749_s18, %s1750_s19  }
  0x29   : > { %p1614_p3 = pnand %p1613_p5, %p1607_p0 }
  0x2b   : > { %1617 = shalt.err (!%p1614_p3)
}
  0x2c   : > { %s2171_s5 = sld [smem:[#allocation17_spill]]  ;;  %s1629_s10 = scalar_lea.vmem %s254_s16, 256 }
  0x2d   : > { %p1630_p10 = scmp.ne.s32.totalorder %s254_s16, %s1629_s10  ;;  %p1637_p9 = scmp.lt.s32.totalorder %s254_s16, %s254_s16 }
  0x2e   : > { %p1638_p13 = scmp.lt.s32.totalorder %s1629_s10, %s1629_s10 }
  0x2f   : > { %p1632_p7 = pnand %p1630_p10, %p1568_p12 }
  0x30   : > { %p1639_p4 = por %p1638_p13, %p1637_p9 }
  0x31   : > { %p1633_p1 = pneg %p1632_p7 }
  0x32   : > { %1451 = dma.hbm_to_vmem [thread:$0]  (!%p1860_p11), %s2171_s5, 128, %s244_s14, [#allocation7]  }
  0x33   : > { %p1640_p2 = pnand %p1639_p4, %p1633_p1 }
  0x35   : > { %1643 = shalt.err (!%p1640_p2)
}
  0x36   : > { %1454 = dma.hbm_to_vmem [thread:$0]  (!%p1860_p11), %s2158_s6, 256, %s254_s16, [#allocation10], %s1749_s18, %s1749_s18, %s1750_s19  }
  0x37   : > { %s1891_s14 = sadd.s32 1, %s1744_s27   ;;  %s32_s12 = sadd.s32 1, %s1740_s26 }
  0x38   : > { %s29_s15 = ssub.s32 %s1744_s27, %s1891_s14  ;;  %p39_p6 = scmp.ne.s32.totalorder %s1740_s26, %s1736_s25 }
  0x39   : > { %p30_p4 = scmp.eq.s32.totalorder %s29_s15, 0  ;;  %p40_p12 = scmp.eq.s32.totalorder %s1744_s27, 0 }
  0x3a   : > { %p1466_p0 = scmp.lt.s32.totalorder %s1744_s27, 2  ;;  %p2172_p3 = scmp.eq.s32.totalorder %s1832_s28, 1 }
  0x3b   : > { %s1901_s17 = scalar_select %p30_p4, %s1740_s26, %s32_s12  }
  0x3c   : > { %p41_p5 = por %p40_p12, %p39_p6  ;;  %p1905_p10 = por %p2172_p3, %p39_p6 }
  0x3d   : > { %s267_s21 = sand.u32 1, %s1740_s26   ;;  %s1284_s22 = sshll.u32 %s1744_s27, 6 }
  0x3e   : > { %s2173_s20 = scalar_select %p1905_p10, 1, 0 }
  0x3f   : > { %s1283_s16 = sshll.u32 %s267_s21, 2  ;;  %s1914_s23 = scalar_lea.hbm %s2152_s0, %s1284_s22 }
  0x40   : > { %s271_s29 = scalar_lea.vmem [#allocation3], %s1283_s16  ;;  %p1916_p11 = pnand %p1466_p0, %p41_p5 }
  0x41   : > { %s278_s10 = sshll.u32 %s271_s29, 4  ;;  %s268_s13 = scalar_lea.sflag [#allocation4], %s267_s21  ;;  %s279_s10 = int_to_ptr.vmem [resolvable:$true] %s278_s10 }
  0x42   : > { %s1644_s15 = scalar_lea.hbm %s1914_s23, 64  ;;  %p1646_p1 = pneg %p1916_p11 }
  0x43   : > { %p1645_p7 = scmp.ne.s32.totalorder %s1914_s23, %s1644_s15  ;;  %s1649_s18 = scalar_lea.hbm %s2152_s0, 128 }
  0x44   : > { %p1650_p2 = scmp.lt.s32.totalorder %s1914_s23, %s2152_s0  ;;  %p1651_p4 = scmp.lt.s32.totalorder %s1649_s18, %s1644_s15 }
  0x45   : > { %p1647_p9 = pnand %p1646_p1, %p1645_p7 }
  0x46   : > { %p1652_p6 = por %p1651_p4, %p1650_p2 }
  0x47   : > { %p1648_p13 = pneg %p1647_p9 }
  0x49   : > { %p1653_p12 = pnand %p1652_p6, %p1648_p13 }
  0x4b   : > { %1656 = shalt.err (!%p1653_p12)
}
  0x4c   : > { %s1657_s29 = scalar_lea.vmem %s279_s10, 64  ;;  %s1751_s21 = smov [#allocation3]  }
  0x4d   : > { %p1658_p0 = scmp.ne.s32.totalorder %s279_s10, %s1657_s29  ;;  %s1662_s2 = sshll.u32 %s1751_s21, 4  ;;  %s1663_s2 = int_to_ptr.vmem [resolvable:$false] %s1662_s2 }
  0x4e   : > { %s1664_s5 = scalar_lea.vmem %s1663_s2, 128  ;;  %p1665_p7 = scmp.lt.s32.totalorder %s279_s10, %s1663_s2 }
  0x4f   : > { %p1660_p5 = pnand %p1658_p0, %p1646_p1  ;;  %p1666_p9 = scmp.lt.s32.totalorder %s1664_s5, %s1657_s29 }
  0x51   : > { %p1661_p3 = pneg %p1660_p5  ;;  %p1667_p10 = por %p1666_p9, %p1665_p7 }
  0x53   : > { %p1668_p8 = pnand %p1667_p10, %p1661_p3 }
  0x55   : > { %1671 = shalt.err (!%p1668_p8)
}
  0x56   : > { %1458 = dma.hbm_to_vmem [thread:$0]  (!%p1916_p11), %s1914_s23, 64, %s279_s10, %s268_s13  }
  0x57   : > { %p2175_p13 = scmp.ne.s32.totalorder %s2168_s9, 0 }
  0x58   : > { %s1937_s15 = sand.u32 (!%p2175_p13), 1, %s1736_s25   ;;  %p2176_p1 = scmp.ne.s32.totalorder (!%p2175_p13), %s2166_s30, 0 }
  0x59   : > { %287 = sbr.rel (%p2175_p13) target bundleno = 1518 (0x5ee), region = 48  ;;  %s1286_s12 = sshll.u32 (!%p2175_p13), %s1937_s15, 2 }
  0x5a   : > { %s290_s22 = scalar_lea.sflag (!%p2175_p13), [#allocation4], %s1937_s15  ;;  %s293_s2 = scalar_lea.vmem (!%p2175_p13), [#allocation3], %s1286_s12 }
  0x5e   : > { %1715 = dma.done.wait (%p2176_p1), %s290_s22, 64  }
  0x5f   : > { %1717 = vsyncadd (%p2176_p1), %s290_s22, 4294967232  ;;  %p2177_p8 = scmp.eq.s32.totalorder %s1832_s28, 0 }
  0x61   : > { %1719 = dma.done.wait (%p2177_p8), [#allocation7], 384   ;;  %p2178_p10 = pmov %p2177_p8 }
  0x62   : > { %p2179_p11 = pmov %p2177_p8 }
  0x63   : > { %1721 = vsyncadd (%p2178_p10), [#allocation7], 4294966912 }
  0x64   : > { %1723 = dma.done.wait (%p2179_p11), [#allocation10], 256   ;;  %p2180_p2 = pmov %p2177_p8 }
  0x65   : > { %v1752_v0 = vmov 0.0   ;;  %vm1753_vm0 = vmmov 0   ;;  %v1526_v1 = vld [vmem:[%s2153_s1 + $0x8] sm:$0xff]   ;;  %v1527_v2 = vld [vmem:[%s2153_s1] sm:$0xff]   ;;  %vm354_vm1 = vcmask 261120   ;;  %s1754_s13 = smov 96   ;;  %v543_v51 = vlaneseq }
  0x66   : > { %1725 = vsyncadd (%p2180_p2), [#allocation10], 4294967040  ;;  %1349 = vmatprep.subr.bf16.mxu0 %v1752_v0  ;;  %1353 = vmatprep.mubr.msk.bf16.mxu0 %vm1753_vm0, %v1752_v0  ;;  %v456_v3 = vld [vmem:[#allocation8] sm:$0xff]  ;;  %v337_v5 = vld [vmem:[%s293_s2] sm:$0xf]  ;;  %s1755_s18 = smov 64  }
  0x67   : > { %1357 = vmatprep.subr.bf16.mxu1 %v1752_v0  ;;  %1361 = vmatprep.mubr.msk.bf16.mxu1 %vm1753_vm0, %v1752_v0  ;;  %v455_v4 = vld [vmem:[%s2156_s4] sm:$0xff]  ;;  %s1756_s19 = smov 32   ;;  %v1528_v6 = vld [vmem:[%s2155_s3 + $0x8] sm:$0xff]   ;;  %v1530_v16 = vld [vmem:[#allocation6 + $0x8] sm:$0xff]   ;;  %s1757_s22 = smov 56   ;;  %vm628_vm2 = vcmask 1043456  }
  0x68   : > { %1350 = vmatpush3.bf16.msra.mxu0 %v1526_v1  ;;  %474 = vrot.lane.b32.xlu0 %v456_v3, %s1754_s13  ;;  %v1529_v7 = vld [vmem:[%s2155_s3] sm:$0xff]   ;;  %v1531_v17 = vld [vmem:[#allocation6] sm:$0xff]   ;;  %s1758_s2 = smov 48   ;;  %s1759_s5 = smov 120   ;;  %vm562_vm3 = vcmask 64512   ;;  %vm821_vm4 = vcmask 48160  }
  0x69   : > { %1351 = vmatprep.subr.bf16.mxu0 %v1752_v0  ;;  %470 = vrot.lane.b32.xlu1 %v455_v4, %s1755_s18  ;;  %s1760_s30 = smov 40   ;;  %s1761_s9 = smov 112   ;;  %vm549_vm5 = vcmask 15360   ;;  %vm678_vm6 = vcmask 31760   ;;  %v544_v52 = vshrl.u32 %v543_v51, 7  ;;  %v546_v53 = vand.u32 127, %v543_v51 }
  0x6a   : > { %1358 = vmatpush3.bf16.msra.mxu1 %v1530_v16  ;;  %s1762_s23 = smov 104   ;;  %v1763_v54 = vmov -1e+30   ;;  %vm962_vm8 = vcmask 64560   ;;  %s1764_s10 = smov 126   ;;  %vm676_vm9 = vcmask 60416  }
  0x6b   : > { %1359 = vmatprep.subr.bf16.mxu1 %v1752_v0  ;;  %vm547_vm7 = vcmp.le.s32.totalorder %v546_v53, %v544_v52  ;;  %s1765_s11 = smov 124   ;;  %s1769_s16 = smov 24   ;;  %vm819_vm10 = vcmask 126016   ;;  %vm960_vm11 = vcmask 191616   ;;  %vm1101_vm12 = vcmask 257216  }
  0x6c   : > { %1352 = vmatpush3.bf16.msra.mxu0 %v1527_v2  ;;  %459 = vrot.lane.b32.xlu0 %v456_v3, %s1756_s19  ;;  %v548_v55 = vsel %vm547_vm7, 0.0, %v1763_v54  ;;  %s1768_s19 = smov 8   ;;  %s1290_s29 = sshll.u32 %s1937_s15, 3 }
  0x6d   : > { %1365 = vmatprep.subr.bf16.mxu0 %v1752_v0  ;;  %s1315_s21 = sshll.u32 %s1832_s28, 7  ;;  %s335_s12 = scalar_lea.vmem [#allocation11], %s1290_s29 }
  0x6e   : > { %1360 = vmatpush3.bf16.msra.mxu1 %v1531_v17  ;;  %p2181_p6 = scmp.ne.s32.totalorder %s2173_s20, 0  ;;  %s1770_s28 = smov [#allocation11]  }
  0x6f   : > { %1354 = vmatmul.mubr.msk.bf16.vlgmr.msra.gmra.mxu0 %vm354_vm1, %v337_v5  ;;  %1373 = vmatprep.subr.bf16.mxu1 %v1752_v0 }
  0x70   : > { %1369 = vmatprep.mubr.msk.bf16.mxu0 %vm1753_vm0, %v1752_v0  ;;  %1366 = vmatpush3.bf16.msra.mxu0 %v1528_v6 }
  0x71   : > { %1367 = vmatprep.subr.bf16.mxu0 %v1752_v0  ;;  %1362 = vmatmul.mubr.msk.bf16.vlgmr.msra.gmra.mxu1 %vm354_vm1, %v337_v5 }
  0x72   : > { %1375 = vmatprep.mubr.msk.bf16.mxu1 %vm1753_vm0, %v1752_v0 }
  0x74   : > { %1368 = vmatpush3.bf16.msra.mxu0 %v1529_v7 }
  0x75   : > { %1379 = vmatprep.subr.bf16.mxu0 %v1752_v0 }
  0xda   : > { %v475_v8 = vpop.permute.xlu0 %474 }
  0xdb   : > { %v471_v18 = vpop.permute.xlu1 %470 }
  0xde   : > { %v460_v9 = vpop.permute.xlu0 %459 }
 0x12f   : > { %v392_v10 = vpop.f32.mrf.mxu0 }
 0x130   : > { %v477_v11 = vmul.f32 %v475_v8, %v392_v10  ;;  %v462_v12 = vmul.f32 %v460_v9, %v392_v10  ;;  %v473_v19 = vmul.f32 %v471_v18, %v392_v10  ;;  %v457_v20 = vmul.f32 %v455_v4, %v392_v10 }
 0x131   : > { %v1355_v13 = vpop.f32.mrf.mxu0  ;;  %v448_v27 = vpop.f32.mrf.mxu1 }
 0x132   : > { %479 = vrot.lane.b32.xlu1 %v477_v11, %s1754_s13  ;;  %464 = vrot.lane.b32.xlu0 %v462_v12, %s1754_s13  ;;  %v1994_v28 = vpack.c.bf16 %v448_v27, %v448_v27  ;;  %s1766_s13 = smov 122  }
 0x133   : > { %v395_v14 = vpop.f32.mrf.mxu0  ;;  %v1363_v29 = vpop.f32.mrf.mxu1 }
 0x134   : > { %v630_v30 = vsel %vm628_vm2, %v1994_v28, 0 }
 0x135   : > { %v1356_v15 = vpop.f32.mrf.mxu0  ;;  %v451_v31 = vpop.f32.mrf.mxu1 }
 0x137   : > { %v1364_v32 = vpop.f32.mrf.mxu1 }
 0x1a4   : > { %v480_v21 = vpop.permute.xlu1 %479  ;;  %v465_v22 = vpop.permute.xlu0 %464 }
 0x1a5   : > { %v482_v23 = vadd.f32 %v480_v21, %v473_v19  ;;  %v467_v24 = vadd.f32 %v465_v22, %v457_v20 }
 0x1a7   : > { %v483_v25 = vpack.c.bf16 %v482_v23, %v482_v23  ;;  %v468_v26 = vpack.c.bf16 %v467_v24, %v467_v24 }
 0x1a9   : > { %560 = vrot.lane.b32.xlu1 %v483_v25, %s1755_s18  ;;  %695 = vrot.lane.b32.xlu0 %v483_v25, %s1757_s22  ;;  %s1767_s18 = smov 16   ;;  %s1178_s22 = sshll.u32 %s335_s12, 4  ;;  %s2110_s22 = int_to_ptr.vmem [resolvable:$true] %s1178_s22 }
 0x1aa   : > { %1370 = vmatmul.mubr.msk.bf16.vlgmr.msra.gmra.mxu0 %vm354_vm1, %v468_v26 }
 0x1ab   : > { %1381 = vmatprep.mubr.msk.bf16.mxu0 %vm1753_vm0, %v1752_v0  ;;  %1380 = vmatpush3.bf16.msra.mxu0 %v630_v30 }
 0x1ac   : > { %1391 = vmatprep.subr.bf16.mxu0 %v1752_v0 }
 0x1ad   : > { %837 = vrot.lane.b32.xlu0 %v483_v25, %s1758_s2  ;;  %693 = vrot.lane.b32.xlu1 %v468_v26, %s1759_s5 }
 0x1b1   : > { %978 = vrot.lane.b32.xlu0 %v483_v25, %s1760_s30  ;;  %835 = vrot.lane.b32.xlu1 %v468_v26, %s1761_s9  ;;  %s2108_s30 = scalar_lea.hbm %s2159_s7, %s1315_s21 }
 0x1b5   : > { %976 = vrot.lane.b32.xlu1 %v468_v26, %s1762_s23 }
 0x21b   : > { %v561_v33 = vpop.permute.xlu1 %560  ;;  %v696_v35 = vpop.permute.xlu0 %695 }
 0x21c   : > { %v566_v34 = vsel %vm562_vm3, %v561_v33, 0  ;;  %v701_v36 = vsel %vm562_vm3, %v696_v35, 0 }
 0x21d   : > { %1374 = vmatpush3.bf16.xpose.msra.mxu1 %v566_v34 }
 0x21e   : > { %1385 = vmatprep.subr.bf16.mxu1 %v1752_v0 }
 0x21f   : > { %v838_v37 = vpop.permute.xlu0 %837  ;;  %v694_v38 = vpop.permute.xlu1 %693 }
 0x220   : > { %v843_v39 = vsel %vm562_vm3, %v838_v37, 0 }
 0x223   : > { %v979_v40 = vpop.permute.xlu0 %978  ;;  %v836_v41 = vpop.permute.xlu1 %835 }
 0x224   : > { %1376 = vmatmul.mubr.msk.bf16.vlgmr.msra.gmra.mxu1 %vm562_vm3, %v468_v26  ;;  %v984_v42 = vsel %vm562_vm3, %v979_v40, 0 }
 0x225   : > { %1386 = vmatpush3.bf16.xpose.msra.mxu1 %v701_v36  ;;  %1387 = vmatprep.mubr.msk.bf16.mxu1 %vm1753_vm0, %v1752_v0 }
 0x226   : > { %1397 = vmatprep.subr.bf16.mxu1 %v1752_v0 }
 0x227   : > { %v977_v43 = vpop.permute.xlu1 %976 }
 0x22c   : > { %1388 = vmatmul.mubr.msk.bf16.vlgmr.msra.gmra.mxu1 %vm562_vm3, %v694_v38 }
 0x22d   : > { %1398 = vmatpush3.bf16.xpose.msra.mxu1 %v843_v39  ;;  %1399 = vmatprep.mubr.msk.bf16.mxu1 %vm1753_vm0, %v1752_v0 }
 0x22e   : > { %1409 = vmatprep.subr.bf16.mxu1 %v1752_v0 }
 0x234   : > { %1400 = vmatmul.mubr.msk.bf16.vlgmr.msra.gmra.mxu1 %vm562_vm3, %v836_v41 }
 0x235   : > { %1410 = vmatpush3.bf16.xpose.msra.mxu1 %v984_v42  ;;  %1411 = vmatprep.mubr.msk.bf16.mxu1 %vm1753_vm0, %v1752_v0 }
 0x236   : > { %1421 = vmatprep.subr.bf16.mxu1 %v1752_v0 }
 0x23c   : > { %1412 = vmatmul.mubr.msk.bf16.vlgmr.msra.gmra.mxu1 %vm562_vm3, %v977_v43 }
 0x23d   : > { %1425 = vmatprep.mubr.msk.bf16.mxu1 %vm1753_vm0, %v1752_v0 }
 0x26a   : > { %v2019_v44 = vpop.f32.mrf.mxu0 }
 0x26b   : > { %v822_v45 = vsel %vm821_vm4, %v2019_v44, -inf  ;;  %v550_v46 = vsel %vm549_vm5, %v2019_v44, -inf  ;;  %v679_v49 = vsel %vm678_vm6, %v2019_v44, -inf  ;;  %v963_v62 = vsel %vm962_vm8, %v2019_v44, -inf }
 0x26c   : > { %823 = vmax.xlane.f32.xlu1 %v822_v45  ;;  %551 = vmax.xlane.f32.xlu0 %v550_v46  ;;  %v1371_v47 = vpop.f32.mrf.mxu0 }
 0x26e   : > { %v540_v48 = vpop.f32.mrf.mxu0 }
 0x270   : > { %680 = vmax.xlane.f32.xlu0 %v679_v49  ;;  %v1372_v50 = vpop.f32.mrf.mxu0 }
 0x2e4   : > { %v602_v56 = vpop.f32.mrf.mxu1 }
 0x2e5   : > { %v603_v57 = vadd.f32 %v602_v56, %v548_v55 }
 0x2e6   : > { %v1377_v58 = vpop.f32.mrf.mxu1 }
 0x2e7   : > { %v608_v59 = vsel %vm562_vm3, %v603_v57, -inf }
 0x2e8   : > { %v605_v60 = vpop.f32.mrf.mxu1  ;;  %609 = vmax.xlane.f32.xlu1 %v608_v59 }
 0x2ea   : > { %v1378_v61 = vpop.f32.mrf.mxu1 }
 0x2ec   : > { %v737_v63 = vpop.f32.mrf.mxu1  ;;  %964 = vmax.xlane.f32.xlu1 %v963_v62 }
 0x2ed   : > { %v738_v1 = vadd.f32 %v737_v63, %v548_v55 }
 0x2ee   : > { %v1389_v2 = vpop.f32.mrf.mxu1 }
 0x2ef   : > { %v743_v3 = vsel %vm562_vm3, %v738_v1, -inf }
 0x2f0   : > { %v740_v4 = vpop.f32.mrf.mxu1  ;;  %744 = vmax.xlane.f32.xlu0 %v743_v3 }
 0x2f2   : > { %v1390_v5 = vpop.f32.mrf.mxu1 }
 0x2f4   : > { %v879_v6 = vpop.f32.mrf.mxu1 }
 0x2f5   : > { %v880_v7 = vadd.f32 %v879_v6, %v548_v55  ;;  %v2028_v8 = vpop.xlane.xlu0 %551  ;;  %v2038_v21 = vpop.xlane.xlu1 %823 }
 0x2f6   : > { %v1401_v9 = vpop.f32.mrf.mxu1  ;;  %v825_v23 = vsub.f32 %v2019_v44, %v2038_v21  ;;  %v553_v63 = vsub.f32 %v2019_v44, %v2028_v8 }
 0x2f7   : > { %v885_v10 = vsel %vm562_vm3, %v880_v7, -inf }
 0x2f8   : > { %v882_v11 = vpop.f32.mrf.mxu1  ;;  %886 = vmax.xlane.f32.xlu0 %v885_v10  ;;  %v826_v24 = vmul.f32 1.442695, %v825_v23  ;;  %v554_v2 = vmul.f32 1.442695, %v553_v63 }
 0x2f9   : > { %v2031_v12 = vpop.xlane.xlu0 %680 }
 0x2fa   : > { %v682_v13 = vsub.f32 %v2019_v44, %v2031_v12  ;;  %v1402_v14 = vpop.f32.mrf.mxu1 }
 0x2fc   : > { %v683_v15 = vmul.f32 1.442695, %v682_v13  ;;  %v1020_v16 = vpop.f32.mrf.mxu1 }
 0x2fd   : > { %v1021_v17 = vadd.f32 %v1020_v16, %v548_v55  ;;  %761 = vrot.lane.b32.xlu1 %v1994_v28, %s1759_s5 }
 0x2fe   : > { %1534 = vpow2.f32 %v683_v15  ;;  %v1413_v18 = vpop.f32.mrf.mxu1 }
 0x2ff   : > { %v1026_v19 = vsel %vm562_vm3, %v1021_v17, -inf  ;;  %1536 = vpow2.f32 %v826_v24 }
 0x300   : > { %v1023_v20 = vpop.f32.mrf.mxu1  ;;  %1027 = vmax.xlane.f32.xlu0 %v1026_v19 }
 0x301   : > { %1043 = vrot.lane.b32.xlu1 %v1994_v28, %s1762_s23  ;;  %s1672_s23 = scalar_lea.vmem %s2110_s22, 128 }
 0x302   : > { %v1414_v22 = vpop.f32.mrf.mxu1  ;;  %p1673_p4 = scmp.ne.s32.totalorder %s2110_s22, %s1672_s23 }
 0x304   : > { %p1674_p12 = pnand %p1673_p4, %p2181_p6 }
 0x306   : > { %p1675_p0 = pneg %p1674_p12 }
 0x30b   : > { %v1535_v25 = vpop.eup %1534 }
 0x30c   : > { %686 = vrot.lane.b32.xlu1 %v1535_v25, %s1764_s10  ;;  %v1537_v26 = vpop.eup %1536  ;;  %s1676_s10 = sshll.u32 %s1770_s28, 4  ;;  %s1677_s10 = int_to_ptr.vmem [resolvable:$false] %s1676_s10 }
 0x30d   : > { %p1679_p5 = scmp.lt.s32.totalorder %s2110_s22, %s1677_s10 }
 0x316   : > { %902 = vrot.lane.b32.xlu0 %v1994_v28, %s1761_s9  ;;  %s1165_s9 = scalar_lea.sflag [#allocation5], %s1937_s15 }
 0x31a   : > { %829 = vrot.lane.b32.xlu0 %v1537_v26, %s1765_s11  ;;  %s1678_s11 = scalar_lea.vmem %s1677_s10, 256 }
 0x31b   : > { %p1680_p3 = scmp.lt.s32.totalorder %s1678_s11, %s1672_s23 }
 0x31d   : > { %p1681_p7 = por %p1680_p3, %p1679_p5 }
 0x31f   : > { %p1682_p9 = pnand %p1681_p7, %p1675_p0 }
 0x371   : > { %v610_v27 = vpop.xlane.xlu1 %609 }
 0x372   : > { %v2047_v29 = vmax.f32 %v2028_v8, %v610_v27 }
 0x374   : > { %v615_v30 = vsub.f32 %v603_v57, %v2047_v29  ;;  %v612_v15 = vsub.f32 %v2028_v8, %v2047_v29 }
 0x375   : > { %v2050_v31 = vpop.xlane.xlu1 %964 }
 0x376   : > { %v616_v32 = vmul.f32 1.442695, %v615_v30  ;;  %v966_v33 = vsub.f32 %v2019_v44, %v2050_v31 }
 0x378   : > { %v967_v34 = vmul.f32 1.442695, %v966_v33  ;;  %1538 = vpow2.f32 %v616_v32 }
 0x379   : > { %v762_v35 = vpop.permute.xlu1 %761  ;;  %v745_v36 = vpop.xlane.xlu0 %744 }
 0x37a   : > { %1540 = vpow2.f32 %v967_v34  ;;  %v2055_v28 = vmax.f32 %v2031_v12, %v745_v36  ;;  %v767_v50 = vsel %vm628_vm2, %v762_v35, 0 }
 0x37c   : > { %v750_v37 = vsub.f32 %v738_v1, %v2055_v28  ;;  %v747_v19 = vsub.f32 %v2031_v12, %v2055_v28 }
 0x37d   : > { %v1044_v38 = vpop.permute.xlu1 %1043 }
 0x37e   : > { %v751_v39 = vmul.f32 1.442695, %v750_v37  ;;  %v1049_v62 = vsel %vm628_vm2, %v1044_v38, 0  ;;  %v748_v20 = vmul.f32 1.442695, %v747_v19 }
 0x380   : > { %1542 = vpow2.f32 %v751_v39 }
 0x381   : > { %v687_v40 = vpop.permute.xlu1 %686  ;;  %v887_v41 = vpop.xlane.xlu0 %886 }
 0x382   : > { %v888_v42 = vmax.f32 %v2038_v21, %v887_v41  ;;  %v689_v43 = vsel %vm549_vm5, %v687_v40, 0.0 }
 0x383   : > { %690 = vadd.xlane.f32.xlu0 %v689_v43 }
 0x384   : > { %v892_v45 = vsub.f32 %v880_v7, %v888_v42  ;;  %v889_v16 = vsub.f32 %v2038_v21, %v888_v42 }
 0x385   : > { %v1539_v46 = vpop.eup %1538 }
 0x386   : > { %v893_v47 = vmul.f32 1.442695, %v892_v45  ;;  %v624_v49 = vpack.c.bf16 %v1539_v46, %v1539_v46  ;;  %v619_v14 = vsel %vm562_vm3, %v1539_v46, 0.0  ;;  %v890_v18 = vmul.f32 1.442695, %v889_v16 }
 0x387   : > { %v1541_v48 = vpop.eup %1540 }
 0x388   : > { %970 = vrot.lane.b32.xlu1 %v1541_v48, %s1766_s13  ;;  %1544 = vpow2.f32 %v893_v47  ;;  %1382 = vmatmul.mubr.msk.bf16.vlgmr.msra.gmra.mxu0 %vm562_vm3, %v624_v49 }
 0x389   : > { %v1028_v51 = vpop.xlane.xlu0 %1027  ;;  %1392 = vmatpush3.bf16.msra.mxu0 %v767_v50  ;;  %1393 = vmatprep.mubr.msk.bf16.mxu0 %vm1753_vm0, %v1752_v0 }
 0x38a   : > { %v2063_v52 = vmax.f32 %v2050_v31, %v1028_v51  ;;  %1403 = vmatprep.subr.bf16.mxu0 %v1752_v0 }
 0x38c   : > { %v1030_v53 = vsub.f32 %v2050_v31, %v2063_v52  ;;  %v1033_v54 = vsub.f32 %v1021_v17, %v2063_v52  ;;  %v613_v17 = vmul.f32 1.442695, %v612_v15  ;;  %v1533_v31 = vld [vmem:[#allocation9] sm:$0xff]  }
 0x38d   : > { %v903_v55 = vpop.permute.xlu0 %902  ;;  %v1543_v56 = vpop.eup %1542 }
 0x38e   : > { %v1034_v57 = vmul.f32 1.442695, %v1033_v54  ;;  %v908_v58 = vsel %vm628_vm2, %v903_v55, 0  ;;  %v759_v59 = vpack.c.bf16 %v1543_v56, %v1543_v56  ;;  %v754_v11 = vsel %vm562_vm3, %v1543_v56, 0.0 }
 0x38f   : > { %v1031_v55 = vmul.f32 1.442695, %v1030_v53 }
 0x390   : > { %1546 = vpow2.f32 %v1034_v57  ;;  %1394 = vmatmul.mubr.msk.bf16.vlgmr.msra.gmra.mxu0 %vm562_vm3, %v759_v59 }
 0x391   : > { %1404 = vmatpush3.bf16.msra.mxu0 %v908_v58  ;;  %1405 = vmatprep.mubr.msk.bf16.mxu0 %vm1753_vm0, %v1752_v0  ;;  %1548 = vpow2.f32 %v554_v2  ;;  %v830_v4 = vpop.permute.xlu0 %829 }
 0x392   : > { %1415 = vmatprep.subr.bf16.mxu0 %v1752_v0  ;;  %v832_v5 = vsel %vm549_vm5, %v830_v4, 0.0  ;;  %1550 = vpow2.f32 %v613_v17 }
 0x393   : > { %1552 = vpow2.f32 %v890_v18 }
 0x394   : > { %1554 = vpow2.f32 %v748_v20 }
 0x395   : > { %v1545_v60 = vpop.eup %1544 }
 0x396   : > { %v901_v61 = vpack.c.bf16 %v1545_v60, %v1545_v60  ;;  %v896_v6 = vsel %vm562_vm3, %v1545_v60, 0.0 }
 0x398   : > { %1406 = vmatmul.mubr.msk.bf16.vlgmr.msra.gmra.mxu0 %vm562_vm3, %v901_v61 }
 0x399   : > { %1416 = vmatpush3.bf16.msra.mxu0 %v1049_v62  ;;  %1417 = vmatprep.mubr.msk.bf16.mxu0 %vm1753_vm0, %v1752_v0 }
 0x39d   : > { %v1547_v1 = vpop.eup %1546 }
 0x39e   : > { %v1042_v3 = vpack.c.bf16 %v1547_v1, %v1547_v1  ;;  %v1549_v7 = vpop.eup %1548  ;;  %v1037_v13 = vsel %vm562_vm3, %v1547_v1, 0.0 }
 0x39f   : > { %v556_v9 = vsel %vm549_vm5, %v1549_v7, 0.0  ;;  %v1551_v23 = vpop.eup %1550 }
 0x3a0   : > { %1418 = vmatmul.mubr.msk.bf16.vlgmr.msra.gmra.mxu0 %vm562_vm3, %v1042_v3  ;;  %v1553_v24 = vpop.eup %1552  ;;  %v623_v27 = vmul.f32 0.0, %v1551_v23 }
 0x3a1   : > { %v1555_v29 = vpop.eup %1554  ;;  %v900_v39 = vmul.f32 0.0, %v1553_v24 }
 0x3a2   : > { %v758_v35 = vmul.f32 0.0, %v1555_v29 }
 0x3ac   : > { %833 = vadd.xlane.f32.xlu1 %v832_v5 }
 0x3b0   : > { %897 = vadd.xlane.f32.xlu1 %v896_v6  ;;  %v1532_v6 = vld [vmem:[#allocation9 + $0x8] sm:$0xff]  }
 0x3b1   : > { %1422 = vmatpush3.bf16.msra.mxu1 %v1532_v6 }
 0x3b2   : > { %1423 = vmatprep.subr.bf16.mxu1 %v1752_v0 }
 0x3b4   : > { %557 = vadd.xlane.f32.xlu1 %v556_v9 }
 0x3b5   : > { %1424 = vmatpush3.bf16.msra.mxu1 %v1533_v31 }
 0x3fa   : > { %v971_v10 = vpop.permute.xlu1 %970 }
 0x3fb   : > { %v973_v44 = vsel %vm549_vm5, %v971_v10, 0.0 }
 0x3fc   : > { %974 = vadd.xlane.f32.xlu0 %v973_v44 }
 0x400   : > { %755 = vadd.xlane.f32.xlu0 %v754_v11 }
 0x404   : > { %1038 = vadd.xlane.f32.xlu0 %v1037_v13 }
 0x408   : > { %620 = vadd.xlane.f32.xlu0 %v619_v14 }
 0x40c   : > { %v691_v56 = vpop.xlane.xlu0 %690 }
 0x40d   : > { %v753_v58 = vmul.f32 %v1555_v29, %v691_v56 }
 0x435   : > { %v834_v22 = vpop.xlane.xlu1 %833 }
 0x436   : > { %v895_v26 = vmul.f32 %v1553_v24, %v834_v22 }
 0x439   : > { %v898_v25 = vpop.xlane.xlu1 %897 }
 0x43a   : > { %v899_v32 = vadd.f32 %v898_v25, %v895_v26 }
 0x43c   : > { %1556 = vrcp.f32 %v899_v32 }
 0x43d   : > { %1558 = vpow2.f32 %v1031_v55  ;;  %v558_v63 = vpop.xlane.xlu1 %557 }
 0x43e   : > { %v618_v3 = vmul.f32 %v1551_v23, %v558_v63 }
 0x448   : > { %v666_v30 = vpop.f32.mrf.mxu0 }
 0x449   : > { %v2095_v8 = vadd.f32 %v666_v30, %v623_v27  ;;  %v1557_v42 = vpop.eup %1556 }
 0x44a   : > { %v1383_v21 = vpop.f32.mrf.mxu0  ;;  %v1559_v61 = vpop.eup %1558 }
 0x44b   : > { %v1041_v53 = vmul.f32 0.0, %v1559_v61 }
 0x44c   : > { %v669_v33 = vpop.f32.mrf.mxu0 }
 0x44e   : > { %v1384_v34 = vpop.f32.mrf.mxu0 }
 0x450   : > { %v803_v12 = vpop.f32.mrf.mxu0 }
 0x451   : > { %v809_v36 = vadd.f32 %v803_v12, %v758_v35 }
 0x452   : > { %v1395_v28 = vpop.f32.mrf.mxu0 }
 0x454   : > { %v806_v37 = vpop.f32.mrf.mxu0 }
 0x456   : > { %v1396_v38 = vpop.f32.mrf.mxu0 }
 0x458   : > { %v944_v40 = vpop.f32.mrf.mxu0 }
 0x459   : > { %v950_v41 = vadd.f32 %v944_v40, %v900_v39 }
 0x45a   : > { %v1407_v43 = vpop.f32.mrf.mxu0 }
 0x45b   : > { %v952_v45 = vmul.f32 %v1557_v42, %v950_v41 }
 0x45c   : > { %v947_v46 = vpop.f32.mrf.mxu0 }
 0x45d   : > { %v1319_v47 = vpack.c.bf16 %v952_v45, %v952_v45 }
 0x45e   : > { %v1408_v48 = vpop.f32.mrf.mxu0 }
 0x45f   : > { %957 = vrot.lane.b32.xlu0 %v1319_v47, %s1767_s18 }
 0x460   : > { %v1085_v49 = vpop.f32.mrf.mxu0 }
 0x461   : > { %v1091_v9 = vadd.f32 %v1085_v49, %v1041_v53 }
 0x462   : > { %v1419_v50 = vpop.f32.mrf.mxu0 }
 0x464   : > { %v1088_v51 = vpop.f32.mrf.mxu0 }
 0x466   : > { %v1420_v54 = vpop.f32.mrf.mxu0 }
 0x485   : > { %v975_v57 = vpop.xlane.xlu0 %974 }
 0x486   : > { %v1036_v62 = vmul.f32 %v1559_v61, %v975_v57 }
 0x489   : > { %v756_v59 = vpop.xlane.xlu0 %755 }
 0x48a   : > { %v757_v60 = vadd.f32 %v756_v59, %v753_v58 }
 0x48c   : > { %1560 = vrcp.f32 %v757_v60 }
 0x48d   : > { %v1039_v1 = vpop.xlane.xlu0 %1038 }
 0x48e   : > { %v1040_v2 = vadd.f32 %v1039_v1, %v1036_v62 }
 0x490   : > { %1562 = vrcp.f32 %v1040_v2 }
 0x491   : > { %v621_v4 = vpop.xlane.xlu0 %620 }
 0x492   : > { %v622_v5 = vadd.f32 %v621_v4, %v618_v3 }
 0x494   : > { %1564 = vrcp.f32 %v622_v5 }
 0x499   : > { %v1561_v52 = vpop.eup %1560 }
 0x49a   : > { %v811_v7 = vmul.f32 %v1561_v52, %v809_v36 }
 0x49c   : > { %v1318_v10 = vpack.c.bf16 %v811_v7, %v811_v7 }
 0x49d   : > { %v1563_v44 = vpop.eup %1562 }
 0x49e   : > { %816 = vrot.lane.b32.xlu1 %v1318_v10, %s1768_s19  ;;  %v1093_v11 = vmul.f32 %v1563_v44, %v1091_v9 }
 0x4a0   : > { %v1320_v13 = vpack.c.bf16 %v1093_v11, %v1093_v11 }
 0x4a1   : > { %v1565_v14 = vpop.eup %1564 }
 0x4a2   : > { %1098 = vrot.lane.b32.xlu1 %v1320_v13, %s1769_s16  ;;  %v674_v15 = vmul.f32 %v1565_v14, %v2095_v8 }
 0x4a4   : > { %v675_v0 = vpack.c.bf16 %v674_v15, %v674_v15 }
 0x4a6   : > { %677 = vst.msk [vmem:[#allocation2] sm:$0xf] %vm676_vm9, %v675_v0 }
 0x4d1   : > { %v958_v17 = vpop.permute.xlu0 %957 }
 0x510   : > { %v817_v16 = vpop.permute.xlu1 %816 }
 0x511   : > { %820 = vst.msk [vmem:[#allocation2] sm:$0xf] %vm819_vm10, %v817_v16 }
 0x512   : > { %961 = vst.msk [vmem:[#allocation2] sm:$0xf] %vm960_vm11, %v958_v17 }
 0x514   : > { %v1099_v18 = vpop.permute.xlu1 %1098 }
 0x515   : > { %1102 = vst.msk [vmem:[#allocation2] sm:$0xf] %vm1101_vm12, %v1099_v18 }
 0x51c   : > { %v1103_v19 = vld [vmem:[#allocation2] sm:$0xf] }
 0x51d   : > { %1426 = vmatmul.mubr.msk.bf16.vlgmr.msra.gmra.mxu1 %vm354_vm1, %v1103_v19 }
 0x5dd   : > { %v1157_v20 = vpop.f32.mrf.mxu1 }
 0x5de   : > { %1163 = vst.msk [vmem:[%s335_s12] sm:$0xff] %vm354_vm1, %v1157_v20 }
 0x5df   : > { %v1427_v22 = vpop.f32.mrf.mxu1 }
 0x5e0   : > { %1685 = shalt.err (!%p1682_p9)
}
 0x5e1   : > { %s1686_s13 = scalar_lea.hbm %s2108_s30, 128  ;;  %s1690_s19 = scalar_lea.hbm %s2159_s7, 256 }
 0x5e2   : > { %p1687_p13 = scmp.ne.s32.totalorder %s2108_s30, %s1686_s13  ;;  %p1691_p10 = scmp.lt.s32.totalorder %s2108_s30, %s2159_s7 }
 0x5e3   : > { %p1692_p11 = scmp.lt.s32.totalorder %s1690_s19, %s1686_s13 }
 0x5e4   : > { %p1688_p1 = pnand %p1687_p13, %p2181_p6 }
 0x5e5   : > { %p1693_p2 = por %p1692_p11, %p1691_p10 }
 0x5e6   : > { %p1689_p8 = pneg %p1688_p1 }
 0x5e8   : > { %p1694_p4 = pnand %p1693_p2, %p1689_p8 }
 0x5ea   : > { %1697 = shalt.err (!%p1694_p4)
}
 0x5eb   : > { %1443 = dma.vmem_to_hbm [thread:$0]  (%p2181_p6), %s2110_s22, 128, %s2108_s30, %s1165_s9   ;;  %v1160_v23 = vpop.f32.mrf.mxu1 }
 0x5ed   : > { %v1428_v24 = vpop.f32.mrf.mxu1 }
 0x5ee PF: > { %s1190_s21 = sand.u32 1, %s1732_s24   ;;  %p2182_p12 = scmp.ne.s32.totalorder %s2167_s8, 0 }
 0x5ef   : > { %p2183_p0 = scmp.ge.s32.totalorder %s1744_s27, 2  ;;  %s1191_s12 = scalar_lea.sflag [#allocation5], %s1190_s21 }
 0x5f1   : > { %p1460_p5 = pnand %p2183_p0, %p2182_p12 }
 0x5f3   : > { %p1461_p3 = pneg %p1460_p5 }
 0x5f5   : > { %1727 = dma.done.wait (%p1461_p3), %s1191_s12, 128  }
 0x5f6   : > { %1729 = vsyncadd (%p1461_p3), %s1191_s12, 4294967168  ;;  %p22_p6 = scmp.ge.s32.totalorder %s1891_s14, 4   ;;  %s2184_s24 = smov %s1736_s25 }
 0x5f7   : > { %s2185_s25 = smov %s1740_s26  ;;  %s2186_s26 = smov %s1901_s17 }
 0x5f8   : > { %s2187_s27 = smov %s1891_s14  ;;  %24 = sbr.rel (!%p22_p6) target bundleno = 10 (0xa), region = 105 }
 0x5fd   :  { %1196 = vsyncpa [#allocation4], 1 }
 0x5fe   :  { %1198 = vsyncpa [#allocation4 + $0x1], 1 }
 0x5ff   :  { %1199 = vsyncpa [#allocation7], 1 }
 0x600   :  { %1200 = vsyncpa [#allocation10], 1 }
 0x601   :  { %1201 = vsyncpa [#allocation5], 1 }
 0x602   :  { %1203 = vsyncpa [#allocation5 + $0x1], 1 }

</bundles_post_ra>
